<compile_context>
chip_gen: v7x
topology: tpu7x:2x2x1
jax: 0.10.0
libtpu: 0.0.40
codegen_flags: <defaults>
</compile_context>

<pallas_src>
import jax
import jax.numpy as jnp
from jax.experimental import pallas as pl
from jax.experimental.pallas import tpu as pltpu

LANE = 128
RESIDENT_PANEL_BYTES = 4 * 1024 * 1024     # keep activation panel VMEM-resident below this
VMEM_LIMIT_BYTES = 32 * 1024 * 1024        # <= physical VMEM on v5e/v6e/v7x


def _round_up(v, m):
    return (v + m - 1) // m * m


def _choose_tiles(n):
    """Return (n_pad, tm, tk) for the node axis."""
    n128 = max(_round_up(n, LANE), LANE)
    if n128 <= 1024:
        # Small graph: one tile per axis, no padding beyond 128.
        return n128, n128, n128
    n_pad = _round_up(n, 512)
    tm = 1024 if n_pad % 1024 == 0 else 512
    tk = 512
    return n_pad, tm, tk


# --------------------------------------------------------------------------
# Hoisted feature transform:  H = Z @ W   (Z already dinv-scaled, bf16)
# --------------------------------------------------------------------------
def _transform_kernel(z_ref, w_ref, h_ref):
    h_ref[...] = jnp.dot(z_ref[...], w_ref[...],
                         preferred_element_type=jnp.float32).astype(jnp.bfloat16)


def transform(z_bf16, w_bf16, *, tm):
    n_pad, fi_pad = z_bf16.shape
    fo_pad = w_bf16.shape[1]
    return pl.pallas_call(
        _transform_kernel,
        out_shape=jax.ShapeDtypeStruct((n_pad, fo_pad), jnp.bfloat16),
        grid=(n_pad // tm,),
        in_specs=[pl.BlockSpec((tm, fi_pad), lambda i: (i, 0)),
                  pl.BlockSpec((fi_pad, fo_pad), lambda i: (0, 0))],
        out_specs=pl.BlockSpec((tm, fo_pad), lambda i: (i, 0)),
        compiler_params=pltpu.CompilerParams(dimension_semantics=("parallel",)),
    )(z_bf16, w_bf16)


# --------------------------------------------------------------------------
# Propagation kernel:
#   acc = A @ Z                      (A int8 tile -> bf16, MXU, f32 acc)
#   out = dinv ⊙ acc [@ W] + b       (epilogue, once per row tile)
#   o   = ReLU(out) [⊙ dinv]         (pre-scaled bf16 for the next layer,
#                                     plain f32 for the last layer)
# --------------------------------------------------------------------------
def _make_prop_kernel(*, fuse_w, prescale_out, resident_z, tk):
    def body(a_ref, z_ref, w_ref, b_ref, d_ref, o_ref, acc_ref):
        j = pl.program_id(1)

        @pl.when(j == 0)
        def _():
            acc_ref[...] = jnp.zeros_like(acc_ref)

        if resident_z:
            # Whole activation panel is VMEM-resident (DMA'd once); slice the
            # rows belonging to this contraction tile.
            zj = z_ref[pl.ds(pl.multiple_of(j * tk, tk), tk), :]
        else:
            zj = z_ref[...]
        # int8 A tile upcast to bf16 right before the dot (VPU filler under DMA).
        acc_ref[...] += jnp.dot(a_ref[...].astype(jnp.bfloat16), zj,
                                preferred_element_type=jnp.float32)

        @pl.when(j == pl.num_programs(1) - 1)
        def _():
            out = d_ref[...] * acc_ref[...]                  # row scaling D^{-1/2}
            if fuse_w:                                       # epilogue transform
                out = jnp.dot(out.astype(jnp.bfloat16), w_ref[...],
                              preferred_element_type=jnp.float32)
            out = jnp.maximum(out + b_ref[...], 0.0)         # bias + ReLU
            if prescale_out:                                 # pre-scale for next layer
                out = d_ref[...] * out
            o_ref[...] = out.astype(o_ref.dtype)

    if fuse_w:
        def kernel(a_ref, z_ref, w_ref, b_ref, d_ref, o_ref, acc_ref):
            body(a_ref, z_ref, w_ref, b_ref, d_ref, o_ref, acc_ref)
    else:
        def kernel(a_ref, z_ref, b_ref, d_ref, o_ref, acc_ref):
            body(a_ref, z_ref, None, b_ref, d_ref, o_ref, acc_ref)
    return kernel


def propagate(a_i8, z_bf16, w_bf16, b_pad, dinv, *, tm, tk,
              fuse_w, prescale_out, out_dtype):
    n_pad = a_i8.shape[0]
    z_width = z_bf16.shape[1]
    fo_pad = w_bf16.shape[1] if fuse_w else z_width
    resident_z = (n_pad * z_width * 2) <= RESIDENT_PANEL_BYTES

    in_specs = [pl.BlockSpec((tm, tk), lambda i, j: (i, j))]               # A (int8)
    if resident_z:
        in_specs.append(pl.BlockSpec((n_pad, z_width), lambda i, j: (0, 0)))  # resident panel
    else:
        in_specs.append(pl.BlockSpec((tk, z_width), lambda i, j: (j, 0)))     # streamed rows
    args = [a_i8, z_bf16]
    if fuse_w:
        in_specs.append(pl.BlockSpec((z_width, fo_pad), lambda i, j: (0, 0)))  # W (resident)
        args.append(w_bf16)
    in_specs += [pl.BlockSpec((1, fo_pad), lambda i, j: (0, 0)),            # bias (resident)
                 pl.BlockSpec((tm, 1), lambda i, j: (i, 0))]                # dinv rows
    args += [b_pad, dinv]

    return pl.pallas_call(
        _make_prop_kernel(fuse_w=fuse_w, prescale_out=prescale_out,
                          resident_z=resident_z, tk=tk),
        out_shape=jax.ShapeDtypeStruct((n_pad, fo_pad), out_dtype),
        grid_spec=pltpu.PrefetchScalarGridSpec(
            num_scalar_prefetch=0,
            grid=(n_pad // tm, n_pad // tk),
            in_specs=in_specs,
            out_specs=pl.BlockSpec((tm, fo_pad), lambda i, j: (i, 0)),
            scratch_shapes=[pltpu.VMEM((tm, z_width), jnp.float32)]),
        compiler_params=pltpu.CompilerParams(
            dimension_semantics=("parallel", "arbitrary"),
            vmem_limit_bytes=VMEM_LIMIT_BYTES),
    )(*args)


# --------------------------------------------------------------------------
# Glue (not the hot path)
# --------------------------------------------------------------------------
def build_graph(edge_index, num_nodes, n_pad):
    """Dense int8 A (+exact unit self-loops) and dinv=rsqrt(deg) (O(E))."""
    src, dst = edge_index[0], edge_index[1]
    a = jnp.zeros((n_pad, n_pad), jnp.float32)
    a = a.at[dst, src].add(1.0)                       # message flows src -> dst
    diag = jnp.arange(num_nodes)
    a = a.at[diag, diag].set(1.0)                     # self-loop weight exactly 1
    # Entries are small edge multiplicities -> lossless int8 (assumes <128
    # parallel edges between any pair); quarters the dominant N^2 HBM stream.
    a_i8 = a.astype(jnp.int8)

    # Degrees directly from edge_index (no extra N^2 pass); +1 for self-loops.
    off_diag = (src != dst).astype(jnp.float32)
    deg = jnp.zeros((n_pad,), jnp.float32).at[dst].add(off_diag)
    real = jnp.arange(n_pad) < num_nodes
    deg = deg + real.astype(jnp.float32)
    dinv = jnp.where(real, jax.lax.rsqrt(jnp.maximum(deg, 1.0)), 0.0)
    return a_i8, dinv.reshape(n_pad, 1)


def init_encoder_params(key, in_channels, out_channels, k=2):
    """Glorot-uniform init matching the Encoder layer shapes."""
    if k == 1:
        dims = [(in_channels, out_channels)]
    else:
        dims = [(in_channels, 2 * out_channels)]
        for _ in range(1, k - 1):
            dims.append((2 * out_channels, 2 * out_channels))
        dims.append((2 * out_channels, out_channels))
    params = []
    for fi, fo in dims:
        key, kw = jax.random.split(key)
        limit = jnp.sqrt(6.0 / (fi + fo))
        w = jax.random.uniform(kw, (fi, fo), jnp.float32, -limit, limit)
        b = jnp.zeros((fo,), jnp.float32)
        params.append((w, b))
    return params


def encoder_forward(x, edge_index, params):
    """for i in range(k): x = ReLU(conv_i(x, edge_index))"""
    n, f_in = x.shape
    n_pad, tm, tk = _choose_tiles(n)

    a_i8, dinv = build_graph(edge_index, n, n_pad)

    f_in_pad = max(_round_up(f_in, LANE), LANE)
    x_pad = jnp.zeros((n_pad, f_in_pad), jnp.float32).at[:n, :f_in].set(
        x.astype(jnp.float32))
    # Pre-scaled, pre-cast activation handed to every layer: z = dinv ⊙ x.
    z = (dinv * x_pad).astype(jnp.bfloat16)

    num_layers = len(params)
    for li, (w, b) in enumerate(params):
        fi, fo = w.shape
        fi_pad = max(_round_up(fi, LANE), LANE)
        fo_pad = max(_round_up(fo, LANE), LANE)
        assert fi_pad == z.shape[1]
        # W/b pre-cast & zero-padded in the wrapper (padding stays inert).
        w_bf = jnp.zeros((fi_pad, fo_pad), jnp.bfloat16).at[:fi, :fo].set(
            w.astype(jnp.bfloat16))
        b_pad = jnp.zeros((1, fo_pad), jnp.float32).at[0, :fo].set(b)

        last = (li == num_layers - 1)
        out_dtype = jnp.float32 if last else jnp.bfloat16
        # Propagate whichever operand is narrower (padded widths); ties ->
        # epilogue transform (keeps the W matmul fused, no extra HBM pass).
        if fo_pad < fi_pad:
            h = transform(z, w_bf, tm=tm)                       # hoisted X@W
            z = propagate(a_i8, h, w_bf, b_pad, dinv, tm=tm, tk=tk,
                          fuse_w=False, prescale_out=not last, out_dtype=out_dtype)
        else:
            z = propagate(a_i8, z, w_bf, b_pad, dinv, tm=tm, tk=tk,
                          fuse_w=True, prescale_out=not last, out_dtype=out_dtype)

    f_out = params[-1][0].shape[1]
    return z[:n, :f_out].astype(jnp.float32)


# --------------------------------------------------------------------------
# Pure-JAX reference (f32 dense math) for correctness checking
# --------------------------------------------------------------------------
def reference_forward(x, edge_index, params):
    n = x.shape[0]
    src, dst = edge_index[0], edge_index[1]
    a = jnp.zeros((n, n), jnp.float32).at[dst, src].add(1.0)
    idx = jnp.arange(n)
    a = a.at[idx, idx].set(1.0)
    dinv = jax.lax.rsqrt(a.sum(axis=1))
    a_hat = dinv[:, None] * a * dinv[None, :]
    h = x.astype(jnp.float32)
    for (w, b) in params:
        h = jnp.maximum(a_hat @ h @ w + b, 0.0)
    return h


def ring_edge_index(n):
    idx = jnp.arange(n)
    src = jnp.concatenate([idx, (idx + 1) % n])
    dst = jnp.concatenate([(idx + 1) % n, idx])
    return jnp.stack([src, dst], axis=0)


if __name__ == "__main__":
    key = jax.random.PRNGKey(0)
    fwd = jax.jit(encoder_forward)

    configs = [
        # tiny: single tile, both layers use the fused epilogue transform
        dict(num_nodes=16, in_channels=4, out_channels=8, k=2),
        # multi-tile: exercises hoisted transform, resident panel slicing and
        # the multi-step contraction accumulator
        dict(num_nodes=1300, in_channels=200, out_channels=8, k=2),
    ]
    for cfg in configs:
        key, kx, kp = jax.random.split(key, 3)
        n, ci, co, k = cfg["num_nodes"], cfg["in_channels"], cfg["out_channels"], cfg["k"]
        x = jax.random.normal(kx, (n, ci), jnp.float32)
        edge_index = ring_edge_index(n)
        params = init_encoder_params(kp, ci, co, k=k)

        out = jax.block_until_ready(fwd(x, edge_index, params))
        assert out.shape == (n, co)
        assert bool(jnp.all(jnp.isfinite(out)))

        ref = reference_forward(x, edge_index, params)
        max_err = float(jnp.max(jnp.abs(out - ref)))
        assert bool(jnp.allclose(out, ref, rtol=0.1, atol=0.15)), max_err

    print("KERNEL_OK")
</pallas_src>

<mosaic_0001>
module attributes {stable_mosaic.version = 11 : i64} {
  func.func private @main(%arg0: i32) attributes {dimension_semantics = [#tpu.dimension_semantics<core_parallel>], iteration_bounds = array<i64: 2>, tpu.core_type = #tpu.core_type<sc_scalar_subcore>, window_params = []} {
    return
  }
}

module attributes {stable_mosaic.version = 11 : i64} {
  func.func private @main(%arg0: i32) attributes {dimension_semantics = [#tpu.dimension_semantics<core_parallel>], iteration_bounds = array<i64: 2>, tpu.core_type = #tpu.core_type<sc_scalar_subcore>, window_params = []} {
    return
  }
}

module attributes {stable_mosaic.version = 11 : i64} {
  func.func @kernel(%arg0: i32, %arg1: i32, %arg2: memref<128x128xi8, #tpu.memory_space<vmem>>, %arg3: memref<128x128xbf16, #tpu.memory_space<vmem>>, %arg4: memref<128x128xbf16, #tpu.memory_space<vmem>>, %arg5: memref<1x128xf32, #tpu.memory_space<vmem>>, %arg6: memref<128x1xf32, #tpu.memory_space<vmem>>, %arg7: memref<128x128xf32, #tpu.memory_space<vmem>>, %arg8: memref<128x128xf32, #tpu.memory_space<vmem>>) attributes {dimension_semantics = [#tpu.dimension_semantics<parallel>, #tpu.dimension_semantics<arbitrary>], iteration_bounds = array<i64: 1, 1>, scalar_prefetch = 0 : i64, scratch_operands = 1 : i64, tpu.core_type = #tpu.core_type<tc>, window_params = [{transform_indices = @transform_0, window_bounds = array<i64: 128, 128>}, {pipeline_mode = #tpu.pipeline_mode<synchronous>, transform_indices = @transform_1, window_bounds = array<i64: 128, 128>}, {pipeline_mode = #tpu.pipeline_mode<synchronous>, transform_indices = @transform_2, window_bounds = array<i64: 128, 128>}, {pipeline_mode = #tpu.pipeline_mode<synchronous>, transform_indices = @transform_3, window_bounds = array<i64: 1, 128>}, {transform_indices = @transform_4, window_bounds = array<i64: 128, 1>}, {transform_indices = @transform_5, window_bounds = array<i64: 128, 128>}]} {
    %c0_i32 = arith.constant 0 : i32
    %0 = arith.cmpi eq, %arg1, %c0_i32 : i32
    %1 = arith.extui %0 : i1 to i32
    %c0_i32_0 = arith.constant 0 : i32
    %2 = arith.cmpi ne, %1, %c0_i32_0 : i32
    scf.if %2 {
      %cst_9 = arith.constant 0.000000e+00 : f32
      %16 = vector.broadcast %cst_9 : f32 to vector<128x128xf32>
      %c0_10 = arith.constant 0 : index
      %c0_11 = arith.constant 0 : index
      %17 = vector.load %arg8[%c0_10, %c0_11] : memref<128x128xf32, #tpu.memory_space<vmem>>, vector<128x128xf32>
      tpu.vector_store %arg8[%c0_10, %c0_11], %16 {strides = array<i32>} : memref<128x128xf32, #tpu.memory_space<vmem>>, vector<128x128xf32>,
    } else {
    }
    %c128_i32 = arith.constant 128 : i32
    %3 = arith.muli %arg1, %c128_i32 : i32
    %4 = tpu.assume_multiple %3, 128 : i32
    %5 = arith.index_cast %4 : i32 to index
    %c0 = arith.constant 0 : index
    %6 = vector.load %arg3[%5, %c0] : memref<128x128xbf16, #tpu.memory_space<vmem>>, vector<128x128xbf16>
    %c0_1 = arith.constant 0 : index
    %c0_2 = arith.constant 0 : index
    %7 = vector.load %arg8[%c0_1, %c0_2] : memref<128x128xf32, #tpu.memory_space<vmem>>, vector<128x128xf32>
    %c0_3 = arith.constant 0 : index
    %c0_4 = arith.constant 0 : index
    %8 = vector.load %arg2[%c0_3, %c0_4] : memref<128x128xi8, #tpu.memory_space<vmem>>, vector<128x128xi8>
    %9 = arith.sitofp %8 : vector<128x128xi8> to vector<128x128xbf16>
    %cst = arith.constant dense<0.000000e+00> : vector<128x128xf32>
    %10 = tpu.matmul %9, %6, %cst {dimension_numbers = #tpu.dot_dimension_numbers<[1], [0], [0], [1], [0, 0, 1, 1], [], []>} : vector<128x128xbf16>, vector<128x128xbf16>, vector<128x128xf32> -> vector<128x128xf32>
    %11 = arith.addf %7, %10 : vector<128x128xf32>
    %c0_5 = arith.constant 0 : index
    %c0_6 = arith.constant 0 : index
    %12 = vector.load %arg8[%c0_5, %c0_6] : memref<128x128xf32, #tpu.memory_space<vmem>>, vector<128x128xf32>
    tpu.vector_store %arg8[%c0_5, %c0_6], %11 {strides = array<i32>} : memref<128x128xf32, #tpu.memory_space<vmem>>, vector<128x128xf32>,
    %c0_i32_7 = arith.constant 0 : i32
    %13 = arith.cmpi eq, %arg1, %c0_i32_7 : i32
    %14 = arith.extui %13 : i1 to i32
    %c0_i32_8 = arith.constant 0 : i32
    %15 = arith.cmpi ne, %14, %c0_i32_8 : i32
    scf.if %15 {
      %c0_9 = arith.constant 0 : index
      %c0_10 = arith.constant 0 : index
      %16 = vector.load %arg6[%c0_9, %c0_10] : memref<128x1xf32, #tpu.memory_space<vmem>>, vector<128x1xf32>
      %c0_11 = arith.constant 0 : index
      %c0_12 = arith.constant 0 : index
      %17 = vector.load %arg8[%c0_11, %c0_12] : memref<128x128xf32, #tpu.memory_space<vmem>>, vector<128x128xf32>
      %18 = vector.broadcast %16 : vector<128x1xf32> to vector<128x128xf32>
      %19 = arith.mulf %18, %17 : vector<128x128xf32>
      %20 = arith.truncf %19 : vector<128x128xf32> to vector<128x128xbf16>
      %c0_13 = arith.constant 0 : index
      %c0_14 = arith.constant 0 : index
      %21 = vector.load %arg4[%c0_13, %c0_14] : memref<128x128xbf16, #tpu.memory_space<vmem>>, vector<128x128xbf16>
      %cst_15 = arith.constant dense<0.000000e+00> : vector<128x128xf32>
      %22 = tpu.matmul %20, %21, %cst_15 {dimension_numbers = #tpu.dot_dimension_numbers<[1], [0], [0], [1], [0, 0, 1, 1], [], []>} : vector<128x128xbf16>, vector<128x128xbf16>, vector<128x128xf32> -> vector<128x128xf32>
      %c0_16 = arith.constant 0 : index
      %c0_17 = arith.constant 0 : index
      %23 = vector.load %arg5[%c0_16, %c0_17] : memref<1x128xf32, #tpu.memory_space<vmem>>, vector<1x128xf32>
      %24 = vector.broadcast %23 : vector<1x128xf32> to vector<128x128xf32>
      %25 = arith.addf %22, %24 : vector<128x128xf32>
      %cst_18 = arith.constant 0.000000e+00 : f32
      %26 = vector.broadcast %cst_18 : f32 to vector<128x128xf32>
      %27 = arith.maximumf %25, %26 : vector<128x128xf32>
      %c0_19 = arith.constant 0 : index
      %c0_20 = arith.constant 0 : index
      %28 = vector.load %arg7[%c0_19, %c0_20] : memref<128x128xf32, #tpu.memory_space<vmem>>, vector<128x128xf32>
      tpu.vector_store %arg7[%c0_19, %c0_20], %27 {strides = array<i32>} : memref<128x128xf32, #tpu.memory_space<vmem>>, vector<128x128xf32>,
    } else {
    }
    return
  }
  func.func @transform_0(%arg0: i32, %arg1: i32) -> (i32, i32) {
    %c0_i32 = arith.constant 0 : i32
    return %arg0, %arg1 : i32, i32
  }
  func.func @transform_1(%arg0: i32, %arg1: i32) -> (i32, i32) {
    %c0_i32 = arith.constant 0 : i32
    %c0_i32_0 = arith.constant 0 : i32
    %c0_i32_1 = arith.constant 0 : i32
    return %c0_i32, %c0_i32_0 : i32, i32
  }
  func.func @transform_2(%arg0: i32, %arg1: i32) -> (i32, i32) {
    %c0_i32 = arith.constant 0 : i32
    %c0_i32_0 = arith.constant 0 : i32
    %c0_i32_1 = arith.constant 0 : i32
    return %c0_i32, %c0_i32_0 : i32, i32
  }
  func.func @transform_3(%arg0: i32, %arg1: i32) -> (i32, i32) {
    %c0_i32 = arith.constant 0 : i32
    %c0_i32_0 = arith.constant 0 : i32
    %c0_i32_1 = arith.constant 0 : i32
    return %c0_i32, %c0_i32_0 : i32, i32
  }
  func.func @transform_4(%arg0: i32, %arg1: i32) -> (i32, i32) {
    %c0_i32 = arith.constant 0 : i32
    %c0_i32_0 = arith.constant 0 : i32
    return %arg0, %c0_i32 : i32, i32
  }
  func.func @transform_5(%arg0: i32, %arg1: i32) -> (i32, i32) {
    %c0_i32 = arith.constant 0 : i32
    %c0_i32_0 = arith.constant 0 : i32
    return %arg0, %c0_i32 : i32, i32
  }
}

module attributes {stable_mosaic.version = 11 : i64} {
  func.func @kernel(%arg0: i32, %arg1: i32, %arg2: memref<128x128xi8, #tpu.memory_space<vmem>>, %arg3: memref<128x128xbf16, #tpu.memory_space<vmem>>, %arg4: memref<128x128xbf16, #tpu.memory_space<vmem>>, %arg5: memref<1x128xf32, #tpu.memory_space<vmem>>, %arg6: memref<128x1xf32, #tpu.memory_space<vmem>>, %arg7: memref<128x128xbf16, #tpu.memory_space<vmem>>, %arg8: memref<128x128xf32, #tpu.memory_space<vmem>>) attributes {dimension_semantics = [#tpu.dimension_semantics<parallel>, #tpu.dimension_semantics<arbitrary>], iteration_bounds = array<i64: 1, 1>, scalar_prefetch = 0 : i64, scratch_operands = 1 : i64, tpu.core_type = #tpu.core_type<tc>, window_params = [{transform_indices = @transform_0, window_bounds = array<i64: 128, 128>}, {pipeline_mode = #tpu.pipeline_mode<synchronous>, transform_indices = @transform_1, window_bounds = array<i64: 128, 128>}, {pipeline_mode = #tpu.pipeline_mode<synchronous>, transform_indices = @transform_2, window_bounds = array<i64: 128, 128>}, {pipeline_mode = #tpu.pipeline_mode<synchronous>, transform_indices = @transform_3, window_bounds = array<i64: 1, 128>}, {transform_indices = @transform_4, window_bounds = array<i64: 128, 1>}, {transform_indices = @transform_5, window_bounds = array<i64: 128, 128>}]} {
    %c0_i32 = arith.constant 0 : i32
    %0 = arith.cmpi eq, %arg1, %c0_i32 : i32
    %1 = arith.extui %0 : i1 to i32
    %c0_i32_0 = arith.constant 0 : i32
    %2 = arith.cmpi ne, %1, %c0_i32_0 : i32
    scf.if %2 {
      %cst_9 = arith.constant 0.000000e+00 : f32
      %16 = vector.broadcast %cst_9 : f32 to vector<128x128xf32>
      %c0_10 = arith.constant 0 : index
      %c0_11 = arith.constant 0 : index
      %17 = vector.load %arg8[%c0_10, %c0_11] : memref<128x128xf32, #tpu.memory_space<vmem>>, vector<128x128xf32>
      tpu.vector_store %arg8[%c0_10, %c0_11], %16 {strides = array<i32>} : memref<128x128xf32, #tpu.memory_space<vmem>>, vector<128x128xf32>,
    } else {
    }
    %c128_i32 = arith.constant 128 : i32
    %3 = arith.muli %arg1, %c128_i32 : i32
    %4 = tpu.assume_multiple %3, 128 : i32
    %5 = arith.index_cast %4 : i32 to index
    %c0 = arith.constant 0 : index
    %6 = vector.load %arg3[%5, %c0] : memref<128x128xbf16, #tpu.memory_space<vmem>>, vector<128x128xbf16>
    %c0_1 = arith.constant 0 : index
    %c0_2 = arith.constant 0 : index
    %7 = vector.load %arg8[%c0_1, %c0_2] : memref<128x128xf32, #tpu.memory_space<vmem>>, vector<128x128xf32>
    %c0_3 = arith.constant 0 : index
    %c0_4 = arith.constant 0 : index
    %8 = vector.load %arg2[%c0_3, %c0_4] : memref<128x128xi8, #tpu.memory_space<vmem>>, vector<128x128xi8>
    %9 = arith.sitofp %8 : vector<128x128xi8> to vector<128x128xbf16>
    %cst = arith.constant dense<0.000000e+00> : vector<128x128xf32>
    %10 = tpu.matmul %9, %6, %cst {dimension_numbers = #tpu.dot_dimension_numbers<[1], [0], [0], [1], [0, 0, 1, 1], [], []>} : vector<128x128xbf16>, vector<128x128xbf16>, vector<128x128xf32> -> vector<128x128xf32>
    %11 = arith.addf %7, %10 : vector<128x128xf32>
    %c0_5 = arith.constant 0 : index
    %c0_6 = arith.constant 0 : index
    %12 = vector.load %arg8[%c0_5, %c0_6] : memref<128x128xf32, #tpu.memory_space<vmem>>, vector<128x128xf32>
    tpu.vector_store %arg8[%c0_5, %c0_6], %11 {strides = array<i32>} : memref<128x128xf32, #tpu.memory_space<vmem>>, vector<128x128xf32>,
    %c0_i32_7 = arith.constant 0 : i32
    %13 = arith.cmpi eq, %arg1, %c0_i32_7 : i32
    %14 = arith.extui %13 : i1 to i32
    %c0_i32_8 = arith.constant 0 : i32
    %15 = arith.cmpi ne, %14, %c0_i32_8 : i32
    scf.if %15 {
      %c0_9 = arith.constant 0 : index
      %c0_10 = arith.constant 0 : index
      %16 = vector.load %arg6[%c0_9, %c0_10] : memref<128x1xf32, #tpu.memory_space<vmem>>, vector<128x1xf32>
      %c0_11 = arith.constant 0 : index
      %c0_12 = arith.constant 0 : index
      %17 = vector.load %arg8[%c0_11, %c0_12] : memref<128x128xf32, #tpu.memory_space<vmem>>, vector<128x128xf32>
      %18 = vector.broadcast %16 : vector<128x1xf32> to vector<128x128xf32>
      %19 = arith.mulf %18, %17 : vector<128x128xf32>
      %20 = arith.truncf %19 : vector<128x128xf32> to vector<128x128xbf16>
      %c0_13 = arith.constant 0 : index
      %c0_14 = arith.constant 0 : index
      %21 = vector.load %arg4[%c0_13, %c0_14] : memref<128x128xbf16, #tpu.memory_space<vmem>>, vector<128x128xbf16>
      %cst_15 = arith.constant dense<0.000000e+00> : vector<128x128xf32>
      %22 = tpu.matmul %20, %21, %cst_15 {dimension_numbers = #tpu.dot_dimension_numbers<[1], [0], [0], [1], [0, 0, 1, 1], [], []>} : vector<128x128xbf16>, vector<128x128xbf16>, vector<128x128xf32> -> vector<128x128xf32>
      %c0_16 = arith.constant 0 : index
      %c0_17 = arith.constant 0 : index
      %23 = vector.load %arg5[%c0_16, %c0_17] : memref<1x128xf32, #tpu.memory_space<vmem>>, vector<1x128xf32>
      %24 = vector.broadcast %23 : vector<1x128xf32> to vector<128x128xf32>
      %25 = arith.addf %22, %24 : vector<128x128xf32>
      %cst_18 = arith.constant 0.000000e+00 : f32
      %26 = vector.broadcast %cst_18 : f32 to vector<128x128xf32>
      %27 = arith.maximumf %25, %26 : vector<128x128xf32>
      %c0_19 = arith.constant 0 : index
      %c0_20 = arith.constant 0 : index
      %28 = vector.load %arg6[%c0_19, %c0_20] : memref<128x1xf32, #tpu.memory_space<vmem>>, vector<128x1xf32>
      %29 = vector.broadcast %28 : vector<128x1xf32> to vector<128x128xf32>
      %30 = arith.mulf %29, %27 : vector<128x128xf32>
      %31 = arith.truncf %30 : vector<128x128xf32> to vector<128x128xbf16>
      %c0_21 = arith.constant 0 : index
      %c0_22 = arith.constant 0 : index
      %32 = vector.load %arg7[%c0_21, %c0_22] : memref<128x128xbf16, #tpu.memory_space<vmem>>, vector<128x128xbf16>
      tpu.vector_store %arg7[%c0_21, %c0_22], %31 {strides = array<i32>} : memref<128x128xbf16, #tpu.memory_space<vmem>>, vector<128x128xbf16>,
    } else {
    }
    return
  }
  func.func @transform_0(%arg0: i32, %arg1: i32) -> (i32, i32) {
    %c0_i32 = arith.constant 0 : i32
    return %arg0, %arg1 : i32, i32
  }
  func.func @transform_1(%arg0: i32, %arg1: i32) -> (i32, i32) {
    %c0_i32 = arith.constant 0 : i32
    %c0_i32_0 = arith.constant 0 : i32
    %c0_i32_1 = arith.constant 0 : i32
    return %c0_i32, %c0_i32_0 : i32, i32
  }
  func.func @transform_2(%arg0: i32, %arg1: i32) -> (i32, i32) {
    %c0_i32 = arith.constant 0 : i32
    %c0_i32_0 = arith.constant 0 : i32
    %c0_i32_1 = arith.constant 0 : i32
    return %c0_i32, %c0_i32_0 : i32, i32
  }
  func.func @transform_3(%arg0: i32, %arg1: i32) -> (i32, i32) {
    %c0_i32 = arith.constant 0 : i32
    %c0_i32_0 = arith.constant 0 : i32
    %c0_i32_1 = arith.constant 0 : i32
    return %c0_i32, %c0_i32_0 : i32, i32
  }
  func.func @transform_4(%arg0: i32, %arg1: i32) -> (i32, i32) {
    %c0_i32 = arith.constant 0 : i32
    %c0_i32_0 = arith.constant 0 : i32
    return %arg0, %c0_i32 : i32, i32
  }
  func.func @transform_5(%arg0: i32, %arg1: i32) -> (i32, i32) {
    %c0_i32 = arith.constant 0 : i32
    %c0_i32_0 = arith.constant 0 : i32
    return %arg0, %c0_i32 : i32, i32
  }
}

</mosaic_0001>

<bundles_post_ra>
// kernel: encoder_forward.3
= control target key start
LH: loop header
LB: loop body
LE: loop exit
PB: predicated region body
PF: predicated region fallthrough
CT: control target
= control target key end

     0   :  { %v744_v1 = vmov 0   ;;  %s934_s1 = inlined_call_operand.vmem [shape: bf16[128,128], index: 1, kind: input, shape index: {}]   ;;  %s935_s0 = inlined_call_operand.vmem [shape: s8[128,128], index: 0, kind: input, shape index: {}]   ;;  %s936_s4 = inlined_call_operand.vmem [shape: f32[128,1], index: 4, kind: input, shape index: {}]   ;;  %s937_s2 = inlined_call_operand.vmem [shape: bf16[128,128], index: 2, kind: input, shape index: {}]   ;;  %s938_s3 = inlined_call_operand.vmem [shape: f32[1,128], index: 3, kind: input, shape index: {}]   ;;  %s939_s5 = inlined_call_operand.vmem [shape: f32[128,128], index: 5, kind: output, shape index: {}]  }
   0x1   :  { %v728_v0 = vld [vmem:[%s934_s1] sm:$0xff]   ;;  %726 = vset.pattern.permute.xlu0 %v744_v1  ;;  %727 = vset.pattern.permute.xlu1 %v744_v1  ;;  %v729_v2 = vld [vmem:[%s934_s1 + $0x8] sm:$0xff]   ;;  %v730_v3 = vld [vmem:[%s934_s1 + $0x10] sm:$0xff]  }
   0x2   :  { %661 = vmatprep.subr.bf16.mxu0 %v728_v0  ;;  %v731_v4 = vld [vmem:[%s934_s1 + $0x18] sm:$0xff]   ;;  %v78_v5 = vld [vmem:[%s935_s0] sm:$0xff]  ;;  %v272_v8 = vld [vmem:[%s936_s4 + $0x10] sm:$0xff] }
   0x3   :  { %662 = vmatpush3.bf16.msra.mxu0 %v728_v0  ;;  %v82_v6 = vunpack.c.l.s8.bf16 %v78_v5  ;;  %v270_v7 = vld [vmem:[%s936_s4] sm:$0xff]  ;;  %314 = vperm.xlu1 %727, %v272_v8   ;;  %v271_v9 = vld [vmem:[%s936_s4 + $0x8] sm:$0xff]  ;;  %v273_v10 = vld [vmem:[%s936_s4 + $0x18] sm:$0xff]  ;;  %v83_v29 = vunpack.c.h.s8.bf16 %v78_v5 }
   0x4   :  { %663 = vmatprep.subr.bf16.mxu0 %v729_v2  ;;  %304 = vperm.xlu0 %726, %v270_v7   ;;  %v732_v11 = vld [vmem:[%s934_s1 + $0x20] sm:$0xff]   ;;  %v733_v12 = vld [vmem:[%s934_s1 + $0x28] sm:$0xff]   ;;  %v276_v16 = vld [vmem:[%s936_s4 + $0x30] sm:$0xff] }
   0x5   :  { %677 = vmatprep.mubr.bf16.mxu0 %v82_v6  ;;  %v274_v13 = vld [vmem:[%s936_s4 + $0x20] sm:$0xff]  ;;  %v275_v14 = vld [vmem:[%s936_s4 + $0x28] sm:$0xff]  ;;  %v277_v17 = vld [vmem:[%s936_s4 + $0x38] sm:$0xff] }
   0x6   :  { %v736_v15 = vld [vmem:[%s937_s2] sm:$0xff]   ;;  %v737_v18 = vld [vmem:[%s937_s2 + $0x8] sm:$0xff]   ;;  %v734_v19 = vld [vmem:[%s934_s1 + $0x30] sm:$0xff]  }
   0x7   :  { %664 = vmatpush3.bf16.msra.mxu0 %v729_v2  ;;  %319 = vperm.xlu1 %727, %v273_v10   ;;  %v738_v20 = vld [vmem:[%s937_s2 + $0x10] sm:$0xff]   ;;  %v278_v21 = vld [vmem:[%s936_s4 + $0x40] sm:$0xff]  ;;  %v279_v22 = vld [vmem:[%s936_s4 + $0x48] sm:$0xff] }
   0x8   :  { %665 = vmatprep.subr.bf16.mxu0 %v730_v3  ;;  %309 = vperm.xlu0 %726, %v271_v9   ;;  %v735_v23 = vld [vmem:[%s934_s1 + $0x38] sm:$0xff]   ;;  %v280_v25 = vld [vmem:[%s936_s4 + $0x50] sm:$0xff]  ;;  %v79_v27 = vld [vmem:[%s935_s0 + $0x8] sm:$0xff] }
   0x9   :  { %693 = vmatprep.subr.bf16.mxu1 %v736_v15  ;;  %v739_v24 = vld [vmem:[%s937_s2 + $0x18] sm:$0xff]   ;;  %v740_v28 = vld [vmem:[%s937_s2 + $0x20] sm:$0xff]   ;;  %v84_v30 = vunpack.c.l.s8.bf16 %v79_v27  ;;  %v283_v32 = vld [vmem:[%s936_s4 + $0x68] sm:$0xff]  ;;  %v85_v37 = vunpack.c.h.s8.bf16 %v79_v27 }
   0xa   :  { %694 = vmatpush3.bf16.msra.mxu1 %v736_v15  ;;  %v281_v26 = vld [vmem:[%s936_s4 + $0x58] sm:$0xff]  ;;  %v282_v31 = vld [vmem:[%s936_s4 + $0x60] sm:$0xff]  ;;  %v741_v33 = vld [vmem:[%s937_s2 + $0x28] sm:$0xff]  }
   0xb   :  { %666 = vmatpush3.bf16.msra.mxu0 %v730_v3  ;;  %329 = vperm.xlu1 %727, %v275_v14   ;;  %v284_v34 = vld [vmem:[%s936_s4 + $0x70] sm:$0xff]  ;;  %v285_v36 = vld [vmem:[%s936_s4 + $0x78] sm:$0xff] }
   0xc   :  { %667 = vmatprep.subr.bf16.mxu0 %v731_v4  ;;  %324 = vperm.xlu0 %726, %v274_v13   ;;  %v80_v35 = vld [vmem:[%s935_s0 + $0x10] sm:$0xff]  ;;  %v81_v39 = vld [vmem:[%s935_s0 + $0x18] sm:$0xff] }
   0xd   :  { %695 = vmatprep.subr.bf16.mxu1 %v737_v18  ;;  %v86_v38 = vunpack.c.l.s8.bf16 %v80_v35  ;;  %v87_v40 = vunpack.c.h.s8.bf16 %v80_v35  ;;  %v88_v41 = vunpack.c.l.s8.bf16 %v81_v39  ;;  %v89_v42 = vunpack.c.h.s8.bf16 %v81_v39  ;;  %v742_v43 = vld [vmem:[%s937_s2 + $0x30] sm:$0xff]   ;;  %v743_v44 = vld [vmem:[%s937_s2 + $0x38] sm:$0xff]  }
   0xe   :  { %696 = vmatpush3.bf16.msra.mxu1 %v737_v18 }
   0xf   :  { %668 = vmatpush3.bf16.msra.mxu0 %v731_v4  ;;  %339 = vperm.xlu1 %727, %v277_v17  }
  0x10   :  { %669 = vmatprep.subr.bf16.mxu0 %v732_v11  ;;  %334 = vperm.xlu0 %726, %v276_v16  }
  0x11   :  { %697 = vmatprep.subr.bf16.mxu1 %v738_v20 }
  0x12   :  { %698 = vmatpush3.bf16.msra.mxu1 %v738_v20 }
  0x13   :  { %670 = vmatpush3.bf16.msra.mxu0 %v732_v11  ;;  %349 = vperm.xlu1 %727, %v279_v22  }
  0x14   :  { %671 = vmatprep.subr.bf16.mxu0 %v733_v12  ;;  %344 = vperm.xlu0 %726, %v278_v21  }
  0x15   :  { %699 = vmatprep.subr.bf16.mxu1 %v739_v24 }
  0x16   :  { %700 = vmatpush3.bf16.msra.mxu1 %v739_v24 }
  0x17   :  { %672 = vmatpush3.bf16.msra.mxu0 %v733_v12  ;;  %359 = vperm.xlu1 %727, %v281_v26  }
  0x18   :  { %673 = vmatprep.subr.bf16.mxu0 %v734_v19  ;;  %354 = vperm.xlu0 %726, %v280_v25  }
  0x19   :  { %701 = vmatprep.subr.bf16.mxu1 %v740_v28 }
  0x1a   :  { %702 = vmatpush3.bf16.msra.mxu1 %v740_v28 }
  0x1b   :  { %674 = vmatpush3.bf16.msra.mxu0 %v734_v19  ;;  %369 = vperm.xlu1 %727, %v283_v32  }
  0x1c   :  { %675 = vmatprep.subr.bf16.mxu0 %v735_v23  ;;  %364 = vperm.xlu0 %726, %v282_v31  }
  0x1d   :  { %703 = vmatprep.subr.bf16.mxu1 %v741_v33 }
  0x1e   :  { %704 = vmatpush3.bf16.msra.mxu1 %v741_v33 }
  0x1f   :  { %676 = vmatpush3.bf16.msra.mxu0 %v735_v23  ;;  %379 = vperm.xlu1 %727, %v285_v36  }
  0x20   :  { %374 = vperm.xlu0 %726, %v284_v34   ;;  %705 = vmatprep.subr.bf16.mxu1 %v742_v43 }
  0x22   :  { %678 = vmatmul.mubr.bf16.vlgmr.msra.gmra.mrb[0].mxu0 %v83_v29  ;;  %706 = vmatpush3.bf16.msra.mxu1 %v742_v43 }
  0x23   :  { %681 = vmatprep.mubr.bf16.mxu0 %v84_v30  ;;  %707 = vmatprep.subr.bf16.mxu1 %v743_v44 }
  0x26   :  { %708 = vmatpush3.bf16.msra.mxu1 %v743_v44 }
  0x2a   :  { %682 = vmatmul.mubr.bf16.gmra.mrb[4].mxu0 %v85_v37  ;;  %v620_v37 = vld [vmem:[%s938_s3] ss:$0 sm:$0xff] }
  0x2b   :  { %685 = vmatprep.mubr.bf16.mxu0 %v86_v38 }
  0x32   :  { %686 = vmatmul.mubr.bf16.gmra.mrb[8].mxu0 %v87_v40 }
  0x33   :  { %689 = vmatprep.mubr.bf16.mxu0 %v88_v41 }
  0x3a   :  { %690 = vmatmul.mubr.bf16.gmra.mrb[12].mxu0 %v89_v42 }
  0x82   :  { %v315_v46 = vpop.permute.xlu1 %314 }
  0x83   :  { %v305_v45 = vpop.permute.xlu0 %304 }
  0x86   :  { %v320_v48 = vpop.permute.xlu1 %319 }
  0x87   :  { %v310_v47 = vpop.permute.xlu0 %309 }
  0x8a   :  { %v330_v50 = vpop.permute.xlu1 %329 }
  0x8b   :  { %v325_v49 = vpop.permute.xlu0 %324 }
  0x8e   :  { %v340_v54 = vpop.permute.xlu1 %339 }
  0x8f   :  { %v335_v52 = vpop.permute.xlu0 %334 }
  0x92   :  { %v350_v0 = vpop.permute.xlu1 %349 }
  0x93   :  { %v345_v63 = vpop.permute.xlu0 %344 }
  0x96   :  { %v360_v11 = vpop.permute.xlu1 %359 }
  0x97   :  { %v355_v9 = vpop.permute.xlu0 %354 }
  0x9a   :  { %v370_v20 = vpop.permute.xlu1 %369 }
  0x9b   :  { %v365_v16 = vpop.permute.xlu0 %364 }
  0x9e   :  { %v380_v28 = vpop.permute.xlu1 %379 }
  0x9f   :  { %v375_v26 = vpop.permute.xlu0 %374 }
  0xf5   :  { %v679_v51 = vpop.f32.mrb[0].mxu0 }
  0xf6   :  { %v172_v53 = vpop.f32.mrb[1].mxu0  ;;  %v384_v56 = vmul.f32 %v679_v51, %v315_v46 }
  0xf7   :  { %v680_v55 = vpop.f32.mrb[2].mxu0  ;;  %v382_v59 = vmul.f32 %v305_v45, %v172_v53 }
  0xf8   :  { %v385_v57 = vmul.f32 %v680_v55, %v320_v48  ;;  %v175_v58 = vpop.f32.mrb[3].mxu0 }
  0xf9   :  { %v383_v60 = vmul.f32 %v310_v47, %v175_v58 }
  0xfa   :  { %v399_v61 = vpack.c.bf16 %v385_v57, %v384_v56 }
  0xfb   :  { %v398_v62 = vpack.c.bf16 %v383_v60, %v382_v59 }
  0xfd   :  { %v683_v1 = vpop.f32.mrb[4].mxu0  ;;  %709 = vmatprep.mubr.bf16.mxu1 %v398_v62 }
  0xfe   :  { %v188_v2 = vpop.f32.mrb[5].mxu0  ;;  %710 = vmatmul.mubr.bf16.vlgmr.msra.gmra.mrb[0].mxu1 %v399_v61  ;;  %v388_v4 = vmul.f32 %v683_v1, %v335_v52 }
  0xff   :  { %v684_v3 = vpop.f32.mrb[6].mxu0  ;;  %v386_v7 = vmul.f32 %v325_v49, %v188_v2 }
 0x100   :  { %v389_v5 = vmul.f32 %v684_v3, %v340_v54  ;;  %v191_v6 = vpop.f32.mrb[7].mxu0 }
 0x101   :  { %v387_v8 = vmul.f32 %v330_v50, %v191_v6 }
 0x102   :  { %v401_v10 = vpack.c.bf16 %v389_v5, %v388_v4 }
 0x103   :  { %v400_v12 = vpack.c.bf16 %v387_v8, %v386_v7 }
 0x105   :  { %v687_v13 = vpop.f32.mrb[8].mxu0  ;;  %713 = vmatprep.mubr.bf16.mxu1 %v400_v12 }
 0x106   :  { %v204_v14 = vpop.f32.mrb[9].mxu0  ;;  %714 = vmatmul.mubr.bf16.gmra.mrb[4].mxu1 %v401_v10  ;;  %v392_v17 = vmul.f32 %v687_v13, %v355_v9 }
 0x107   :  { %v688_v15 = vpop.f32.mrb[10].mxu0  ;;  %v390_v21 = vmul.f32 %v345_v63, %v204_v14 }
 0x108   :  { %v393_v18 = vmul.f32 %v688_v15, %v360_v11  ;;  %v207_v19 = vpop.f32.mrb[11].mxu0 }
 0x109   :  { %v391_v22 = vmul.f32 %v350_v0, %v207_v19 }
 0x10a   :  { %v403_v23 = vpack.c.bf16 %v393_v18, %v392_v17 }
 0x10b   :  { %v402_v24 = vpack.c.bf16 %v391_v22, %v390_v21 }
 0x10d   :  { %v691_v25 = vpop.f32.mrb[12].mxu0  ;;  %717 = vmatprep.mubr.bf16.mxu1 %v402_v24 }
 0x10e   :  { %v220_v27 = vpop.f32.mrb[13].mxu0  ;;  %718 = vmatmul.mubr.bf16.gmra.mrb[8].mxu1 %v403_v23  ;;  %v396_v30 = vmul.f32 %v691_v25, %v375_v26 }
 0x10f   :  { %v692_v29 = vpop.f32.mrb[14].mxu0  ;;  %v394_v33 = vmul.f32 %v365_v16, %v220_v27 }
 0x110   :  { %v397_v31 = vmul.f32 %v692_v29, %v380_v28  ;;  %v223_v32 = vpop.f32.mrb[15].mxu0 }
 0x111   :  { %v395_v34 = vmul.f32 %v370_v20, %v223_v32 }
 0x112   :  { %v405_v35 = vpack.c.bf16 %v397_v31, %v396_v30 }
 0x113   :  { %v404_v36 = vpack.c.bf16 %v395_v34, %v394_v33 }
 0x115   :  { %721 = vmatprep.mubr.bf16.mxu1 %v404_v36 }
 0x116   :  { %722 = vmatmul.mubr.bf16.gmra.mrb[12].mxu1 %v405_v35 }
 0x1d1   :  { %v711_v38 = vpop.f32.mrb[0].mxu1 }
 0x1d2   :  { %v520_v39 = vadd.f32 %v711_v38, %v620_v37  ;;  %v511_v40 = vpop.f32.mrb[1].mxu1 }
 0x1d3   :  { %v512_v41 = vadd.f32 %v620_v37, %v511_v40  ;;  %v712_v42 = vpop.f32.mrb[2].mxu1 }
 0x1d4   :  { %v576_v43 = vmax.f32 %v520_v39, 0.0  ;;  %v523_v44 = vadd.f32 %v712_v42, %v620_v37  ;;  %v514_v45 = vpop.f32.mrb[3].mxu1 }
 0x1d5   :  { %v574_v46 = vmax.f32 %v512_v41, 0.0  ;;  %v515_v47 = vadd.f32 %v620_v37, %v514_v45 }
 0x1d6   :  { %592 = vst [vmem:[%s939_s5 + $0x10] sm:$0xff] %v576_v43  ;;  %v577_v48 = vmax.f32 %v523_v44, 0.0 }
 0x1d7   :  { %590 = vst [vmem:[%s939_s5] sm:$0xff] %v574_v46  ;;  %v575_v49 = vmax.f32 %v515_v47, 0.0 }
 0x1d8   :  { %593 = vst [vmem:[%s939_s5 + $0x18] sm:$0xff] %v577_v48 }
 0x1d9   :  { %591 = vst [vmem:[%s939_s5 + $0x8] sm:$0xff] %v575_v49  ;;  %v715_v50 = vpop.f32.mrb[4].mxu1 }
 0x1da   :  { %v536_v51 = vadd.f32 %v715_v50, %v620_v37  ;;  %v527_v52 = vpop.f32.mrb[5].mxu1 }
 0x1db   :  { %v528_v53 = vadd.f32 %v620_v37, %v527_v52  ;;  %v716_v54 = vpop.f32.mrb[6].mxu1 }
 0x1dc   :  { %v580_v55 = vmax.f32 %v536_v51, 0.0  ;;  %v539_v56 = vadd.f32 %v716_v54, %v620_v37  ;;  %v530_v57 = vpop.f32.mrb[7].mxu1 }
 0x1dd   :  { %v578_v58 = vmax.f32 %v528_v53, 0.0  ;;  %v531_v59 = vadd.f32 %v620_v37, %v530_v57 }
 0x1de   :  { %596 = vst [vmem:[%s939_s5 + $0x30] sm:$0xff] %v580_v55  ;;  %v581_v60 = vmax.f32 %v539_v56, 0.0 }
 0x1df   :  { %594 = vst [vmem:[%s939_s5 + $0x20] sm:$0xff] %v578_v58  ;;  %v579_v61 = vmax.f32 %v531_v59, 0.0 }
 0x1e0   :  { %597 = vst [vmem:[%s939_s5 + $0x38] sm:$0xff] %v581_v60 }
 0x1e1   :  { %595 = vst [vmem:[%s939_s5 + $0x28] sm:$0xff] %v579_v61  ;;  %v719_v62 = vpop.f32.mrb[8].mxu1 }
 0x1e2   :  { %v552_v63 = vadd.f32 %v719_v62, %v620_v37  ;;  %v543_v0 = vpop.f32.mrb[9].mxu1 }
 0x1e3   :  { %v544_v1 = vadd.f32 %v620_v37, %v543_v0  ;;  %v720_v2 = vpop.f32.mrb[10].mxu1 }
 0x1e4   :  { %v584_v3 = vmax.f32 %v552_v63, 0.0  ;;  %v555_v4 = vadd.f32 %v720_v2, %v620_v37  ;;  %v546_v5 = vpop.f32.mrb[11].mxu1 }
 0x1e5   :  { %v582_v6 = vmax.f32 %v544_v1, 0.0  ;;  %v547_v7 = vadd.f32 %v620_v37, %v546_v5 }
 0x1e6   :  { %600 = vst [vmem:[%s939_s5 + $0x50] sm:$0xff] %v584_v3  ;;  %v585_v8 = vmax.f32 %v555_v4, 0.0 }
 0x1e7   :  { %598 = vst [vmem:[%s939_s5 + $0x40] sm:$0xff] %v582_v6  ;;  %v583_v9 = vmax.f32 %v547_v7, 0.0 }
 0x1e8   :  { %601 = vst [vmem:[%s939_s5 + $0x58] sm:$0xff] %v585_v8 }
 0x1e9   :  { %599 = vst [vmem:[%s939_s5 + $0x48] sm:$0xff] %v583_v9  ;;  %v723_v10 = vpop.f32.mrb[12].mxu1 }
 0x1ea   :  { %v568_v11 = vadd.f32 %v723_v10, %v620_v37  ;;  %v559_v12 = vpop.f32.mrb[13].mxu1 }
 0x1eb   :  { %v560_v13 = vadd.f32 %v620_v37, %v559_v12  ;;  %v724_v14 = vpop.f32.mrb[14].mxu1 }
 0x1ec   :  { %v588_v15 = vmax.f32 %v568_v11, 0.0  ;;  %v571_v16 = vadd.f32 %v724_v14, %v620_v37  ;;  %v562_v17 = vpop.f32.mrb[15].mxu1 }
 0x1ed   :  { %v586_v18 = vmax.f32 %v560_v13, 0.0  ;;  %v563_v19 = vadd.f32 %v620_v37, %v562_v17 }
 0x1ee   :  { %604 = vst [vmem:[%s939_s5 + $0x70] sm:$0xff] %v588_v15  ;;  %v589_v20 = vmax.f32 %v571_v16, 0.0 }
 0x1ef   :  { %602 = vst [vmem:[%s939_s5 + $0x60] sm:$0xff] %v586_v18  ;;  %v587_v21 = vmax.f32 %v563_v19, 0.0 }
 0x1f0   :  { %605 = vst [vmem:[%s939_s5 + $0x78] sm:$0xff] %v589_v20 }
 0x1f1   :  { %603 = vst [vmem:[%s939_s5 + $0x68] sm:$0xff] %v587_v21 }

// kernel: encoder_forward.2
= control target key start
LH: loop header
LB: loop body
LE: loop exit
PB: predicated region body
PF: predicated region fallthrough
CT: control target
= control target key end

     0   :  { %v903_v1 = vmov 0   ;;  %s1151_s1 = inlined_call_operand.vmem [shape: bf16[128,128], index: 1, kind: input, shape index: {}]   ;;  %s1152_s0 = inlined_call_operand.vmem [shape: s8[128,128], index: 0, kind: input, shape index: {}]   ;;  %s1153_s4 = inlined_call_operand.vmem [shape: f32[128,1], index: 4, kind: input, shape index: {}]   ;;  %s1154_s2 = inlined_call_operand.vmem [shape: bf16[128,128], index: 2, kind: input, shape index: {}]   ;;  %s1155_s3 = inlined_call_operand.vmem [shape: f32[1,128], index: 3, kind: input, shape index: {}]   ;;  %s1156_s5 = inlined_call_operand.vmem [shape: bf16[128,128], index: 5, kind: output, shape index: {}]  }
   0x1   :  { %v887_v0 = vld [vmem:[%s1151_s1] sm:$0xff]   ;;  %885 = vset.pattern.permute.xlu0 %v903_v1  ;;  %886 = vset.pattern.permute.xlu1 %v903_v1  ;;  %v888_v2 = vld [vmem:[%s1151_s1 + $0x8] sm:$0xff]   ;;  %v889_v3 = vld [vmem:[%s1151_s1 + $0x10] sm:$0xff]  }
   0x2   :  { %820 = vmatprep.subr.bf16.mxu0 %v887_v0  ;;  %v890_v4 = vld [vmem:[%s1151_s1 + $0x18] sm:$0xff]   ;;  %v78_v5 = vld [vmem:[%s1152_s0] sm:$0xff]  ;;  %v272_v8 = vld [vmem:[%s1153_s4 + $0x10] sm:$0xff] }
   0x3   :  { %821 = vmatpush3.bf16.msra.mxu0 %v887_v0  ;;  %v82_v6 = vunpack.c.l.s8.bf16 %v78_v5  ;;  %v270_v7 = vld [vmem:[%s1153_s4] sm:$0xff]  ;;  %314 = vperm.xlu1 %886, %v272_v8   ;;  %v271_v9 = vld [vmem:[%s1153_s4 + $0x8] sm:$0xff]  ;;  %v273_v10 = vld [vmem:[%s1153_s4 + $0x18] sm:$0xff]  ;;  %v83_v29 = vunpack.c.h.s8.bf16 %v78_v5 }
   0x4   :  { %822 = vmatprep.subr.bf16.mxu0 %v888_v2  ;;  %304 = vperm.xlu0 %885, %v270_v7   ;;  %v891_v11 = vld [vmem:[%s1151_s1 + $0x20] sm:$0xff]   ;;  %v892_v12 = vld [vmem:[%s1151_s1 + $0x28] sm:$0xff]   ;;  %v276_v16 = vld [vmem:[%s1153_s4 + $0x30] sm:$0xff] }
   0x5   :  { %836 = vmatprep.mubr.bf16.mxu0 %v82_v6  ;;  %v274_v13 = vld [vmem:[%s1153_s4 + $0x20] sm:$0xff]  ;;  %v275_v14 = vld [vmem:[%s1153_s4 + $0x28] sm:$0xff]  ;;  %v277_v17 = vld [vmem:[%s1153_s4 + $0x38] sm:$0xff] }
   0x6   :  { %v895_v15 = vld [vmem:[%s1154_s2] sm:$0xff]   ;;  %v896_v18 = vld [vmem:[%s1154_s2 + $0x8] sm:$0xff]   ;;  %v893_v19 = vld [vmem:[%s1151_s1 + $0x30] sm:$0xff]  }
   0x7   :  { %823 = vmatpush3.bf16.msra.mxu0 %v888_v2  ;;  %319 = vperm.xlu1 %886, %v273_v10   ;;  %v897_v20 = vld [vmem:[%s1154_s2 + $0x10] sm:$0xff]   ;;  %v278_v21 = vld [vmem:[%s1153_s4 + $0x40] sm:$0xff]  ;;  %v279_v22 = vld [vmem:[%s1153_s4 + $0x48] sm:$0xff] }
   0x8   :  { %824 = vmatprep.subr.bf16.mxu0 %v889_v3  ;;  %309 = vperm.xlu0 %885, %v271_v9   ;;  %v894_v23 = vld [vmem:[%s1151_s1 + $0x38] sm:$0xff]   ;;  %v280_v25 = vld [vmem:[%s1153_s4 + $0x50] sm:$0xff]  ;;  %v79_v27 = vld [vmem:[%s1152_s0 + $0x8] sm:$0xff] }
   0x9   :  { %852 = vmatprep.subr.bf16.mxu1 %v895_v15  ;;  %v898_v24 = vld [vmem:[%s1154_s2 + $0x18] sm:$0xff]   ;;  %v899_v28 = vld [vmem:[%s1154_s2 + $0x20] sm:$0xff]   ;;  %v84_v30 = vunpack.c.l.s8.bf16 %v79_v27  ;;  %v283_v32 = vld [vmem:[%s1153_s4 + $0x68] sm:$0xff]  ;;  %v85_v37 = vunpack.c.h.s8.bf16 %v79_v27 }
   0xa   :  { %853 = vmatpush3.bf16.msra.mxu1 %v895_v15  ;;  %v281_v26 = vld [vmem:[%s1153_s4 + $0x58] sm:$0xff]  ;;  %v282_v31 = vld [vmem:[%s1153_s4 + $0x60] sm:$0xff]  ;;  %v900_v33 = vld [vmem:[%s1154_s2 + $0x28] sm:$0xff]  }
   0xb   :  { %825 = vmatpush3.bf16.msra.mxu0 %v889_v3  ;;  %329 = vperm.xlu1 %886, %v275_v14   ;;  %v284_v34 = vld [vmem:[%s1153_s4 + $0x70] sm:$0xff]  ;;  %v285_v36 = vld [vmem:[%s1153_s4 + $0x78] sm:$0xff] }
   0xc   :  { %826 = vmatprep.subr.bf16.mxu0 %v890_v4  ;;  %324 = vperm.xlu0 %885, %v274_v13   ;;  %v80_v35 = vld [vmem:[%s1152_s0 + $0x10] sm:$0xff]  ;;  %v81_v39 = vld [vmem:[%s1152_s0 + $0x18] sm:$0xff] }
   0xd   :  { %854 = vmatprep.subr.bf16.mxu1 %v896_v18  ;;  %v86_v38 = vunpack.c.l.s8.bf16 %v80_v35  ;;  %v87_v40 = vunpack.c.h.s8.bf16 %v80_v35  ;;  %v88_v41 = vunpack.c.l.s8.bf16 %v81_v39  ;;  %v89_v42 = vunpack.c.h.s8.bf16 %v81_v39  ;;  %v901_v43 = vld [vmem:[%s1154_s2 + $0x30] sm:$0xff]   ;;  %v902_v44 = vld [vmem:[%s1154_s2 + $0x38] sm:$0xff]  }
   0xe   :  { %855 = vmatpush3.bf16.msra.mxu1 %v896_v18 }
   0xf   :  { %827 = vmatpush3.bf16.msra.mxu0 %v890_v4  ;;  %339 = vperm.xlu1 %886, %v277_v17  }
  0x10   :  { %828 = vmatprep.subr.bf16.mxu0 %v891_v11  ;;  %334 = vperm.xlu0 %885, %v276_v16  }
  0x11   :  { %856 = vmatprep.subr.bf16.mxu1 %v897_v20 }
  0x12   :  { %857 = vmatpush3.bf16.msra.mxu1 %v897_v20 }
  0x13   :  { %829 = vmatpush3.bf16.msra.mxu0 %v891_v11  ;;  %349 = vperm.xlu1 %886, %v279_v22  }
  0x14   :  { %830 = vmatprep.subr.bf16.mxu0 %v892_v12  ;;  %344 = vperm.xlu0 %885, %v278_v21  }
  0x15   :  { %858 = vmatprep.subr.bf16.mxu1 %v898_v24 }
  0x16   :  { %859 = vmatpush3.bf16.msra.mxu1 %v898_v24 }
  0x17   :  { %831 = vmatpush3.bf16.msra.mxu0 %v892_v12  ;;  %359 = vperm.xlu1 %886, %v281_v26  }
  0x18   :  { %832 = vmatprep.subr.bf16.mxu0 %v893_v19  ;;  %354 = vperm.xlu0 %885, %v280_v25  }
  0x19   :  { %860 = vmatprep.subr.bf16.mxu1 %v899_v28 }
  0x1a   :  { %861 = vmatpush3.bf16.msra.mxu1 %v899_v28 }
  0x1b   :  { %833 = vmatpush3.bf16.msra.mxu0 %v893_v19  ;;  %369 = vperm.xlu1 %886, %v283_v32  }
  0x1c   :  { %834 = vmatprep.subr.bf16.mxu0 %v894_v23  ;;  %364 = vperm.xlu0 %885, %v282_v31  }
  0x1d   :  { %862 = vmatprep.subr.bf16.mxu1 %v900_v33 }
  0x1e   :  { %863 = vmatpush3.bf16.msra.mxu1 %v900_v33 }
  0x1f   :  { %835 = vmatpush3.bf16.msra.mxu0 %v894_v23  ;;  %379 = vperm.xlu1 %886, %v285_v36  }
  0x20   :  { %374 = vperm.xlu0 %885, %v284_v34   ;;  %864 = vmatprep.subr.bf16.mxu1 %v901_v43 }
  0x22   :  { %837 = vmatmul.mubr.bf16.vlgmr.msra.gmra.mrb[0].mxu0 %v83_v29  ;;  %865 = vmatpush3.bf16.msra.mxu1 %v901_v43 }
  0x23   :  { %840 = vmatprep.mubr.bf16.mxu0 %v84_v30  ;;  %866 = vmatprep.subr.bf16.mxu1 %v902_v44 }
  0x26   :  { %867 = vmatpush3.bf16.msra.mxu1 %v902_v44 }
  0x2a   :  { %841 = vmatmul.mubr.bf16.gmra.mrb[4].mxu0 %v85_v37  ;;  %v1093_v37 = vld [vmem:[%s1155_s3] ss:$0 sm:$0xff] }
  0x2b   :  { %844 = vmatprep.mubr.bf16.mxu0 %v86_v38 }
  0x32   :  { %845 = vmatmul.mubr.bf16.gmra.mrb[8].mxu0 %v87_v40 }
  0x33   :  { %848 = vmatprep.mubr.bf16.mxu0 %v88_v41 }
  0x3a   :  { %849 = vmatmul.mubr.bf16.gmra.mrb[12].mxu0 %v89_v42 }
  0x82   :  { %v1044_v46 = vpop.permute.xlu1 %314 }
  0x83   :  { %v1042_v45 = vpop.permute.xlu0 %304 }
  0x86   :  { %v1048_v48 = vpop.permute.xlu1 %319 }
  0x87   :  { %v1046_v47 = vpop.permute.xlu0 %309 }
  0x8a   :  { %v1052_v50 = vpop.permute.xlu1 %329 }
  0x8b   :  { %v1050_v49 = vpop.permute.xlu0 %324 }
  0x8e   :  { %v1056_v54 = vpop.permute.xlu1 %339 }
  0x8f   :  { %v1054_v52 = vpop.permute.xlu0 %334 }
  0x92   :  { %v1064_v0 = vpop.permute.xlu1 %349 }
  0x93   :  { %v1062_v63 = vpop.permute.xlu0 %344 }
  0x96   :  { %v1072_v11 = vpop.permute.xlu1 %359 }
  0x97   :  { %v1070_v9 = vpop.permute.xlu0 %354 }
  0x9a   :  { %v1078_v20 = vpop.permute.xlu1 %369 }
  0x9b   :  { %v1074_v16 = vpop.permute.xlu0 %364 }
  0x9e   :  { %v1084_v28 = vpop.permute.xlu1 %379 }
  0x9f   :  { %v1082_v26 = vpop.permute.xlu0 %374 }
  0xf5   :  { %v838_v51 = vpop.f32.mrb[0].mxu0 }
  0xf6   :  { %v172_v53 = vpop.f32.mrb[1].mxu0  ;;  %v384_v56 = vmul.f32 %v838_v51, %v1044_v46 }
  0xf7   :  { %v839_v55 = vpop.f32.mrb[2].mxu0  ;;  %v382_v59 = vmul.f32 %v1042_v45, %v172_v53 }
  0xf8   :  { %v385_v57 = vmul.f32 %v839_v55, %v1048_v48  ;;  %v175_v58 = vpop.f32.mrb[3].mxu0 }
  0xf9   :  { %v383_v60 = vmul.f32 %v1046_v47, %v175_v58 }
  0xfa   :  { %v399_v61 = vpack.c.bf16 %v385_v57, %v384_v56 }
  0xfb   :  { %v398_v62 = vpack.c.bf16 %v383_v60, %v382_v59 }
  0xfd   :  { %v842_v1 = vpop.f32.mrb[4].mxu0  ;;  %868 = vmatprep.mubr.bf16.mxu1 %v398_v62 }
  0xfe   :  { %v188_v2 = vpop.f32.mrb[5].mxu0  ;;  %869 = vmatmul.mubr.bf16.vlgmr.msra.gmra.mrb[0].mxu1 %v399_v61  ;;  %v388_v4 = vmul.f32 %v842_v1, %v1054_v52 }
  0xff   :  { %v843_v3 = vpop.f32.mrb[6].mxu0  ;;  %v386_v7 = vmul.f32 %v1050_v49, %v188_v2 }
 0x100   :  { %v389_v5 = vmul.f32 %v843_v3, %v1056_v54  ;;  %v191_v6 = vpop.f32.mrb[7].mxu0 }
 0x101   :  { %v387_v8 = vmul.f32 %v1052_v50, %v191_v6 }
 0x102   :  { %v401_v10 = vpack.c.bf16 %v389_v5, %v388_v4 }
 0x103   :  { %v400_v12 = vpack.c.bf16 %v387_v8, %v386_v7 }
 0x105   :  { %v846_v13 = vpop.f32.mrb[8].mxu0  ;;  %872 = vmatprep.mubr.bf16.mxu1 %v400_v12 }
 0x106   :  { %v204_v14 = vpop.f32.mrb[9].mxu0  ;;  %873 = vmatmul.mubr.bf16.gmra.mrb[4].mxu1 %v401_v10  ;;  %v392_v17 = vmul.f32 %v846_v13, %v1070_v9 }
 0x107   :  { %v847_v15 = vpop.f32.mrb[10].mxu0  ;;  %v390_v21 = vmul.f32 %v1062_v63, %v204_v14 }
 0x108   :  { %v393_v18 = vmul.f32 %v847_v15, %v1072_v11  ;;  %v207_v19 = vpop.f32.mrb[11].mxu0 }
 0x109   :  { %v391_v22 = vmul.f32 %v1064_v0, %v207_v19 }
 0x10a   :  { %v403_v23 = vpack.c.bf16 %v393_v18, %v392_v17 }
 0x10b   :  { %v402_v24 = vpack.c.bf16 %v391_v22, %v390_v21 }
 0x10d   :  { %v850_v25 = vpop.f32.mrb[12].mxu0  ;;  %876 = vmatprep.mubr.bf16.mxu1 %v402_v24 }
 0x10e   :  { %v220_v27 = vpop.f32.mrb[13].mxu0  ;;  %877 = vmatmul.mubr.bf16.gmra.mrb[8].mxu1 %v403_v23  ;;  %v396_v30 = vmul.f32 %v850_v25, %v1082_v26 }
 0x10f   :  { %v851_v29 = vpop.f32.mrb[14].mxu0  ;;  %v394_v33 = vmul.f32 %v1074_v16, %v220_v27 }
 0x110   :  { %v397_v31 = vmul.f32 %v851_v29, %v1084_v28  ;;  %v223_v32 = vpop.f32.mrb[15].mxu0 }
 0x111   :  { %v395_v34 = vmul.f32 %v1078_v20, %v223_v32 }
 0x112   :  { %v405_v35 = vpack.c.bf16 %v397_v31, %v396_v30 }
 0x113   :  { %v404_v36 = vpack.c.bf16 %v395_v34, %v394_v33 }
 0x115   :  { %880 = vmatprep.mubr.bf16.mxu1 %v404_v36 }
 0x116   :  { %881 = vmatmul.mubr.bf16.gmra.mrb[12].mxu1 %v405_v35 }
 0x1d1   :  { %v870_v38 = vpop.f32.mrb[0].mxu1 }
 0x1d2   :  { %v520_v39 = vadd.f32 %v870_v38, %v1093_v37  ;;  %v511_v40 = vpop.f32.mrb[1].mxu1 }
 0x1d3   :  { %v512_v41 = vadd.f32 %v1093_v37, %v511_v40  ;;  %v871_v42 = vpop.f32.mrb[2].mxu1 }
 0x1d4   :  { %v576_v43 = vmax.f32 %v520_v39, 0.0  ;;  %v523_v44 = vadd.f32 %v871_v42, %v1093_v37  ;;  %v514_v51 = vpop.f32.mrb[3].mxu1 }
 0x1d5   :  { %v574_v53 = vmax.f32 %v512_v41, 0.0  ;;  %v515_v55 = vadd.f32 %v1093_v37, %v514_v51 }
 0x1d6   :  { %v577_v56 = vmax.f32 %v523_v44, 0.0  ;;  %v592_v58 = vmul.f32 %v576_v43, %v1044_v46 }
 0x1d7   :  { %v575_v57 = vmax.f32 %v515_v55, 0.0  ;;  %v590_v60 = vmul.f32 %v574_v53, %v1042_v45 }
 0x1d8   :  { %v593_v59 = vmul.f32 %v577_v56, %v1048_v48 }
 0x1d9   :  { %v591_v61 = vmul.f32 %v575_v57, %v1046_v47  ;;  %v874_v62 = vpop.f32.mrb[4].mxu1 }
 0x1da   :  { %v749_v1 = vpack.c.bf16 %v593_v59, %v592_v58  ;;  %v536_v2 = vadd.f32 %v874_v62, %v1093_v37  ;;  %v527_v3 = vpop.f32.mrb[5].mxu1 }
 0x1db   :  { %v744_v4 = vpack.c.bf16 %v591_v61, %v590_v60  ;;  %v528_v5 = vadd.f32 %v1093_v37, %v527_v3  ;;  %v875_v6 = vpop.f32.mrb[6].mxu1 }
 0x1dc   :  { %781 = vst [vmem:[%s1156_s5 + $0x8] sm:$0xff] %v749_v1   ;;  %v580_v46 = vmax.f32 %v536_v2, 0.0  ;;  %v539_v48 = vadd.f32 %v875_v6, %v1093_v37  ;;  %v530_v7 = vpop.f32.mrb[7].mxu1 }
 0x1dd   :  { %745 = vst [vmem:[%s1156_s5] sm:$0xff] %v744_v4   ;;  %v578_v45 = vmax.f32 %v528_v5, 0.0  ;;  %v531_v47 = vadd.f32 %v1093_v37, %v530_v7 }
 0x1de   :  { %v581_v8 = vmax.f32 %v539_v48, 0.0  ;;  %v596_v12 = vmul.f32 %v580_v46, %v1054_v52 }
 0x1df   :  { %v579_v10 = vmax.f32 %v531_v47, 0.0  ;;  %v594_v14 = vmul.f32 %v578_v45, %v1050_v49 }
 0x1e0   :  { %v597_v13 = vmul.f32 %v581_v8, %v1056_v54 }
 0x1e1   :  { %v595_v15 = vmul.f32 %v579_v10, %v1052_v50  ;;  %v878_v17 = vpop.f32.mrb[8].mxu1 }
 0x1e2   :  { %v759_v18 = vpack.c.bf16 %v597_v13, %v596_v12  ;;  %v552_v19 = vadd.f32 %v878_v17, %v1093_v37  ;;  %v543_v21 = vpop.f32.mrb[9].mxu1 }
 0x1e3   :  { %v754_v22 = vpack.c.bf16 %v595_v15, %v594_v14  ;;  %v544_v23 = vadd.f32 %v1093_v37, %v543_v21  ;;  %v879_v24 = vpop.f32.mrb[10].mxu1 }
 0x1e4   :  { %783 = vst [vmem:[%s1156_s5 + $0x18] sm:$0xff] %v759_v18   ;;  %v584_v52 = vmax.f32 %v552_v19, 0.0  ;;  %v555_v54 = vadd.f32 %v879_v24, %v1093_v37  ;;  %v546_v25 = vpop.f32.mrb[11].mxu1 }
 0x1e5   :  { %782 = vst [vmem:[%s1156_s5 + $0x10] sm:$0xff] %v754_v22   ;;  %v582_v49 = vmax.f32 %v544_v23, 0.0  ;;  %v547_v50 = vadd.f32 %v1093_v37, %v546_v25 }
 0x1e6   :  { %v585_v27 = vmax.f32 %v555_v54, 0.0  ;;  %v600_v30 = vmul.f32 %v584_v52, %v1070_v9 }
 0x1e7   :  { %v583_v29 = vmax.f32 %v547_v50, 0.0  ;;  %v598_v32 = vmul.f32 %v582_v49, %v1062_v63 }
 0x1e8   :  { %v601_v31 = vmul.f32 %v585_v27, %v1072_v11 }
 0x1e9   :  { %v599_v33 = vmul.f32 %v583_v29, %v1064_v0  ;;  %v882_v34 = vpop.f32.mrb[12].mxu1 }
 0x1ea   :  { %v769_v35 = vpack.c.bf16 %v601_v31, %v600_v30  ;;  %v568_v36 = vadd.f32 %v882_v34, %v1093_v37  ;;  %v559_v38 = vpop.f32.mrb[13].mxu1 }
 0x1eb   :  { %v764_v39 = vpack.c.bf16 %v599_v33, %v598_v32  ;;  %v560_v40 = vadd.f32 %v1093_v37, %v559_v38  ;;  %v883_v41 = vpop.f32.mrb[14].mxu1 }
 0x1ec   :  { %785 = vst [vmem:[%s1156_s5 + $0x28] sm:$0xff] %v769_v35   ;;  %v588_v9 = vmax.f32 %v568_v36, 0.0  ;;  %v571_v11 = vadd.f32 %v883_v41, %v1093_v37  ;;  %v562_v42 = vpop.f32.mrb[15].mxu1 }
 0x1ed   :  { %784 = vst [vmem:[%s1156_s5 + $0x20] sm:$0xff] %v764_v39   ;;  %v586_v63 = vmax.f32 %v560_v40, 0.0  ;;  %v563_v0 = vadd.f32 %v1093_v37, %v562_v42 }
 0x1ee   :  { %v589_v43 = vmax.f32 %v571_v11, 0.0  ;;  %v604_v51 = vmul.f32 %v588_v9, %v1082_v26 }
 0x1ef   :  { %v587_v44 = vmax.f32 %v563_v0, 0.0  ;;  %v602_v55 = vmul.f32 %v586_v63, %v1074_v16 }
 0x1f0   :  { %v605_v53 = vmul.f32 %v589_v43, %v1084_v28 }
 0x1f1   :  { %v603_v56 = vmul.f32 %v587_v44, %v1078_v20 }
 0x1f2   :  { %v779_v57 = vpack.c.bf16 %v605_v53, %v604_v51 }
 0x1f3   :  { %v774_v58 = vpack.c.bf16 %v603_v56, %v602_v55 }
 0x1f4   :  { %787 = vst [vmem:[%s1156_s5 + $0x38] sm:$0xff] %v779_v57  }
 0x1f5   :  { %786 = vst [vmem:[%s1156_s5 + $0x30] sm:$0xff] %v774_v58  }

</bundles_post_ra>
